<compile_context>
chip_gen: v5e
topology: v5e:2x2
jax: 0.10.0
libtpu: 0.0.40
codegen_flags: <defaults>
</compile_context>

<pallas_src>
import functools

import numpy as np
import jax
import jax.numpy as jnp
from jax.experimental import pallas as pl
from jax.experimental.pallas import tpu as pltpu


# --------------------------- in-kernel helpers ---------------------------

def _shift_flat(a, shift):
    """result[:, r] = a[:, r + shift] when in range, else 0 (zero halo)."""
    if shift == 0:
        return a
    c, s = a.shape
    pad = jnp.zeros((c, abs(shift)), a.dtype)
    if shift > 0:
        return jnp.concatenate([a[:, shift:], pad], axis=1)
    return jnp.concatenate([pad, a[:, : s + shift]], axis=1)


def _conv3x3_bn_relu(a, mask_ref, w_ref, s_ref, b_ref, W):
    """3x3 same-conv + folded BN affine + ReLU on channel-major flat activations.

    a:        (C_in_p, S)  activations, S = H*W flattened spatial (lane axis)
    mask_ref: (3, S)       column-validity masks indexed by dx (source-side)
    w_ref:    (C_out_p, 9*C_in_p)  im2col-packed weights, tap order (dy, dx, ci)
    s_ref/b_ref: (C_out_p, 1)      fused per-channel scale / shift
    returns:  (C_out_p, S) float32
    """
    # Source-side masks kill the row-wrap artifacts of the +-1 column shifts.
    srcs = (a * mask_ref[0:1, :], a, a * mask_ref[2:3, :])   # dx = -1, 0, +1

    cols = []
    for dy in (-1, 0, 1):
        for dx in (-1, 0, 1):
            cols.append(_shift_flat(srcs[dx + 1], dy * W + dx))
    patch = jnp.concatenate(cols, axis=0)                    # (9*C_in_p, S)

    # Single fat MXU matmul per conv stage (K = 9*C_in_p), f32 accumulation.
    y = jnp.dot(w_ref[...], patch, preferred_element_type=jnp.float32)
    y = y * s_ref[...] + b_ref[...]                          # folded bias + BN
    return jnp.maximum(y, 0.0)                               # ReLU


def _double_conv_kernel(x_ref, mask_ref, w1_ref, s1_ref, b1_ref,
                        w2_ref, s2_ref, b2_ref, o_ref, *, W):
    """One batch element: (conv3x3 + BN + ReLU) x2, intermediate stays on-chip.

    x_ref: (1, Cin_p, S)    o_ref: (1, Cout_p, S)   (S = H*W, lane-dense)
    """
    x = x_ref[0]                                              # (Cin_p, S)
    y1 = _conv3x3_bn_relu(x, mask_ref, w1_ref, s1_ref, b1_ref, W)
    y2 = _conv3x3_bn_relu(y1, mask_ref, w2_ref, s2_ref, b2_ref, W)
    o_ref[0] = y2.astype(o_ref.dtype)


# ------------------------------ pallas call ------------------------------

def _double_conv_pallas(x_flat, masks, w1p, s1, b1, w2p, s2, b2, *, W):
    N, Cin_p, S = x_flat.shape
    Cout_p = w1p.shape[0]
    kernel = functools.partial(_double_conv_kernel, W=W)

    return pl.pallas_call(
        kernel,
        out_shape=jax.ShapeDtypeStruct((N, Cout_p, S), x_flat.dtype),
        grid=(N,),
        in_specs=[
            pl.BlockSpec((1, Cin_p, S), lambda n: (n, 0, 0)),
            pl.BlockSpec((3, S), lambda n: (0, 0)),
            pl.BlockSpec((Cout_p, 9 * Cin_p), lambda n: (0, 0)),
            pl.BlockSpec((Cout_p, 1), lambda n: (0, 0)),
            pl.BlockSpec((Cout_p, 1), lambda n: (0, 0)),
            pl.BlockSpec((Cout_p, 9 * Cout_p), lambda n: (0, 0)),
            pl.BlockSpec((Cout_p, 1), lambda n: (0, 0)),
            pl.BlockSpec((Cout_p, 1), lambda n: (0, 0)),
        ],
        out_specs=pl.BlockSpec((1, Cout_p, S), lambda n: (n, 0, 0)),
        compiler_params=pltpu.CompilerParams(
            dimension_semantics=("parallel",)),
    )(x_flat, masks, w1p, s1, b1, w2p, s2, b2)


# ------------------------------ host wrapper ------------------------------

def _round_up(x, m):
    return (x + m - 1) // m * m


def _fold_bn(conv_bias, gamma, beta, running_mean, running_var, eps=1e-5):
    """Fold conv bias + BatchNorm(inference) into per-channel scale/shift."""
    scale = gamma / jnp.sqrt(running_var + eps)
    shift = beta + (conv_bias - running_mean) * scale
    return scale, shift


def _pad_col(v, n):
    out = jnp.zeros((n, 1), v.dtype)
    return out.at[: v.shape[0], 0].set(v)


def _pack_weights(w_oihw, cout_p, cin_p):
    """OIHW conv weights -> (cout_p, 9*cin_p), tap-major (dy, dx, ci) order."""
    O, I, KH, KW = w_oihw.shape
    wp = jnp.zeros((cout_p, KH, KW, cin_p), w_oihw.dtype)
    wp = wp.at[:O, :, :, :I].set(jnp.transpose(w_oihw, (0, 2, 3, 1)))
    return wp.reshape(cout_p, KH * KW * cin_p)


def double_conv(x_nchw, params):
    """Forward pass of DoubleConv. Input/output are NCHW (PyTorch convention)."""
    (w1, b1, g1, be1, m1, v1, w2, b2, g2, be2, m2, v2) = params
    N, Cin, H, W = x_nchw.shape
    Cout = w1.shape[0]
    S = H * W
    Cin_p = _round_up(Cin, 8)
    Cout_p = _round_up(Cout, 8)

    # Channel-major flattened activations; pad channels to a sublane multiple.
    x_flat = x_nchw.reshape(N, Cin, S)
    if Cin_p != Cin:
        x_flat = jnp.pad(x_flat, ((0, 0), (0, Cin_p - Cin), (0, 0)))

    # Column-validity masks indexed by dx (applied to the shift *source*):
    #   dx=0 (ox=-1): source column W-1 is never read -> zero it.
    #   dx=2 (ox=+1): source column 0   is never read -> zero it.
    w_idx = jnp.arange(S, dtype=jnp.int32) % W
    masks = jnp.stack([
        (w_idx <= W - 2).astype(x_flat.dtype),
        jnp.ones((S,), x_flat.dtype),
        (w_idx >= 1).astype(x_flat.dtype),
    ], axis=0)                                                # (3, S)

    w1p = _pack_weights(w1, Cout_p, Cin_p)
    w2p = _pack_weights(w2, Cout_p, Cout_p)

    s1, sh1 = _fold_bn(b1, g1, be1, m1, v1)
    s2, sh2 = _fold_bn(b2, g2, be2, m2, v2)
    s1, sh1 = _pad_col(s1, Cout_p), _pad_col(sh1, Cout_p)
    s2, sh2 = _pad_col(s2, Cout_p), _pad_col(sh2, Cout_p)

    out_flat = _double_conv_pallas(x_flat, masks, w1p, s1, sh1, w2p, s2, sh2, W=W)
    return out_flat[:, :Cout, :].reshape(N, Cout, H, W)


# -------------------- pure-JAX reference (for verification) --------------------

def _ref_conv_bn_relu(x_nchw, w_oihw, bias, gamma, beta, mean, var, eps=1e-5):
    y = jax.lax.conv_general_dilated(
        x_nchw, w_oihw, window_strides=(1, 1), padding=((1, 1), (1, 1)),
        dimension_numbers=("NCHW", "OIHW", "NCHW"),
    ) + bias.reshape(1, -1, 1, 1)
    y = (y - mean.reshape(1, -1, 1, 1)) / jnp.sqrt(var.reshape(1, -1, 1, 1) + eps)
    y = y * gamma.reshape(1, -1, 1, 1) + beta.reshape(1, -1, 1, 1)
    return jnp.maximum(y, 0.0)


def _ref_double_conv(x, params):
    (w1, b1, g1, be1, m1, v1, w2, b2, g2, be2, m2, v2) = params
    y = _ref_conv_bn_relu(x, w1, b1, g1, be1, m1, v1)
    y = _ref_conv_bn_relu(y, w2, b2, g2, be2, m2, v2)
    return y


if __name__ == "__main__":
    key = jax.random.PRNGKey(0)
    N, CH_IN, CH_OUT, H, W = 2, 4, 8, 16, 16

    ks = jax.random.split(key, 12)
    x = jax.random.normal(ks[0], (N, CH_IN, H, W), jnp.float32)

    # Conv1 + BN1 parameters (deterministic init).
    w1 = 0.1 * jax.random.normal(ks[1], (CH_OUT, CH_IN, 3, 3), jnp.float32)
    b1 = 0.05 * jax.random.normal(ks[2], (CH_OUT,), jnp.float32)
    g1 = 1.0 + 0.1 * jax.random.normal(ks[3], (CH_OUT,), jnp.float32)
    be1 = 0.1 * jax.random.normal(ks[4], (CH_OUT,), jnp.float32)
    m1 = 0.05 * jax.random.normal(ks[5], (CH_OUT,), jnp.float32)
    v1 = 1.0 + 0.1 * jax.random.uniform(ks[6], (CH_OUT,), jnp.float32)

    # Conv2 + BN2 parameters.
    w2 = 0.1 * jax.random.normal(ks[7], (CH_OUT, CH_OUT, 3, 3), jnp.float32)
    b2 = 0.05 * jax.random.normal(ks[8], (CH_OUT,), jnp.float32)
    g2 = 1.0 + 0.1 * jax.random.normal(ks[9], (CH_OUT,), jnp.float32)
    be2 = 0.1 * jax.random.normal(ks[10], (CH_OUT,), jnp.float32)
    m2 = 0.05 * jax.random.normal(ks[11], (CH_OUT,), jnp.float32)
    v2 = 1.0 + 0.1 * jax.random.uniform(ks[0], (CH_OUT,), jnp.float32)

    params = (w1, b1, g1, be1, m1, v1, w2, b2, g2, be2, m2, v2)

    out = jax.jit(double_conv)(x, params)
    out = jax.block_until_ready(out)

    ref = _ref_double_conv(x, params)
    np.testing.assert_allclose(np.asarray(out), np.asarray(ref),
                               rtol=1e-4, atol=1e-4)

    print("KERNEL_OK")
</pallas_src>

<mosaic_0001>
module attributes {stable_mosaic.version = 11 : i64} {
  func.func @_double_conv_kernel(%arg0: i32, %arg1: memref<1x8x256xf32, #tpu.memory_space<vmem>>, %arg2: memref<3x256xf32, #tpu.memory_space<vmem>>, %arg3: memref<8x72xf32, #tpu.memory_space<vmem>>, %arg4: memref<8x1xf32, #tpu.memory_space<vmem>>, %arg5: memref<8x1xf32, #tpu.memory_space<vmem>>, %arg6: memref<8x72xf32, #tpu.memory_space<vmem>>, %arg7: memref<8x1xf32, #tpu.memory_space<vmem>>, %arg8: memref<8x1xf32, #tpu.memory_space<vmem>>, %arg9: memref<1x8x256xf32, #tpu.memory_space<vmem>>) attributes {dimension_semantics = [#tpu.dimension_semantics<parallel>], iteration_bounds = array<i64: 2>, scalar_prefetch = 0 : i64, scratch_operands = 0 : i64, tpu.core_type = #tpu.core_type<tc>, window_params = [{transform_indices = @transform_0, window_bounds = array<i64: 1, 8, 256>}, {pipeline_mode = #tpu.pipeline_mode<synchronous>, transform_indices = @transform_1, window_bounds = array<i64: 3, 256>}, {pipeline_mode = #tpu.pipeline_mode<synchronous>, transform_indices = @transform_2, window_bounds = array<i64: 8, 72>}, {pipeline_mode = #tpu.pipeline_mode<synchronous>, transform_indices = @transform_3, window_bounds = array<i64: 8, 1>}, {pipeline_mode = #tpu.pipeline_mode<synchronous>, transform_indices = @transform_4, window_bounds = array<i64: 8, 1>}, {pipeline_mode = #tpu.pipeline_mode<synchronous>, transform_indices = @transform_5, window_bounds = array<i64: 8, 72>}, {pipeline_mode = #tpu.pipeline_mode<synchronous>, transform_indices = @transform_6, window_bounds = array<i64: 8, 1>}, {pipeline_mode = #tpu.pipeline_mode<synchronous>, transform_indices = @transform_7, window_bounds = array<i64: 8, 1>}, {transform_indices = @transform_8, window_bounds = array<i64: 1, 8, 256>}]} {
    %c0 = arith.constant 0 : index
    %c0_0 = arith.constant 0 : index
    %c0_1 = arith.constant 0 : index
    %0 = vector.load %arg1[%c0, %c0_0, %c0_1] : memref<1x8x256xf32, #tpu.memory_space<vmem>>, vector<1x8x256xf32>
    %1 = vector.shape_cast %0 : vector<1x8x256xf32> to vector<8x256xf32>
    %c0_2 = arith.constant 0 : index
    %c0_3 = arith.constant 0 : index
    %2 = vector.load %arg2[%c0_2, %c0_3] : memref<3x256xf32, #tpu.memory_space<vmem>>, vector<1x256xf32>
    %3 = vector.broadcast %2 : vector<1x256xf32> to vector<8x256xf32>
    %4 = arith.mulf %1, %3 : vector<8x256xf32>
    %c2 = arith.constant 2 : index
    %c0_4 = arith.constant 0 : index
    %5 = vector.load %arg2[%c2, %c0_4] : memref<3x256xf32, #tpu.memory_space<vmem>>, vector<1x256xf32>
    %6 = vector.broadcast %5 : vector<1x256xf32> to vector<8x256xf32>
    %7 = arith.mulf %1, %6 : vector<8x256xf32>
    %cst = arith.constant 0.000000e+00 : f32
    %8 = vector.broadcast %cst : f32 to vector<8x17xf32>
    %9 = vector.extract_strided_slice %4 {offsets = [0, 0], sizes = [8, 239], strides = [1, 1]} : vector<8x256xf32> to vector<8x239xf32>
    %10 = tpu.concatenate %8, %9 in 1 : vector<8x17xf32>, vector<8x239xf32> -> vector<8x256xf32>
    %cst_5 = arith.constant 0.000000e+00 : f32
    %11 = vector.broadcast %cst_5 : f32 to vector<8x16xf32>
    %12 = vector.extract_strided_slice %1 {offsets = [0, 0], sizes = [8, 240], strides = [1, 1]} : vector<8x256xf32> to vector<8x240xf32>
    %13 = tpu.concatenate %11, %12 in 1 : vector<8x16xf32>, vector<8x240xf32> -> vector<8x256xf32>
    %cst_6 = arith.constant 0.000000e+00 : f32
    %14 = vector.broadcast %cst_6 : f32 to vector<8x15xf32>
    %15 = vector.extract_strided_slice %7 {offsets = [0, 0], sizes = [8, 241], strides = [1, 1]} : vector<8x256xf32> to vector<8x241xf32>
    %16 = tpu.concatenate %14, %15 in 1 : vector<8x15xf32>, vector<8x241xf32> -> vector<8x256xf32>
    %cst_7 = arith.constant 0.000000e+00 : f32
    %17 = vector.broadcast %cst_7 : f32 to vector<8x1xf32>
    %18 = vector.extract_strided_slice %4 {offsets = [0, 0], sizes = [8, 255], strides = [1, 1]} : vector<8x256xf32> to vector<8x255xf32>
    %19 = tpu.concatenate %17, %18 in 1 : vector<8x1xf32>, vector<8x255xf32> -> vector<8x256xf32>
    %cst_8 = arith.constant 0.000000e+00 : f32
    %20 = vector.broadcast %cst_8 : f32 to vector<8x1xf32>
    %21 = vector.extract_strided_slice %7 {offsets = [0, 1], sizes = [8, 255], strides = [1, 1]} : vector<8x256xf32> to vector<8x255xf32>
    %22 = tpu.concatenate %21, %20 in 1 : vector<8x255xf32>, vector<8x1xf32> -> vector<8x256xf32>
    %cst_9 = arith.constant 0.000000e+00 : f32
    %23 = vector.broadcast %cst_9 : f32 to vector<8x15xf32>
    %24 = vector.extract_strided_slice %4 {offsets = [0, 15], sizes = [8, 241], strides = [1, 1]} : vector<8x256xf32> to vector<8x241xf32>
    %25 = tpu.concatenate %24, %23 in 1 : vector<8x241xf32>, vector<8x15xf32> -> vector<8x256xf32>
    %cst_10 = arith.constant 0.000000e+00 : f32
    %26 = vector.broadcast %cst_10 : f32 to vector<8x16xf32>
    %27 = vector.extract_strided_slice %1 {offsets = [0, 16], sizes = [8, 240], strides = [1, 1]} : vector<8x256xf32> to vector<8x240xf32>
    %28 = tpu.concatenate %27, %26 in 1 : vector<8x240xf32>, vector<8x16xf32> -> vector<8x256xf32>
    %cst_11 = arith.constant 0.000000e+00 : f32
    %29 = vector.broadcast %cst_11 : f32 to vector<8x17xf32>
    %30 = vector.extract_strided_slice %7 {offsets = [0, 17], sizes = [8, 239], strides = [1, 1]} : vector<8x256xf32> to vector<8x239xf32>
    %31 = tpu.concatenate %30, %29 in 1 : vector<8x239xf32>, vector<8x17xf32> -> vector<8x256xf32>
    %32 = tpu.concatenate %10, %13, %16, %19, %1, %22, %25, %28, %31 in 0 : vector<8x256xf32>, vector<8x256xf32>, vector<8x256xf32>, vector<8x256xf32>, vector<8x256xf32>, vector<8x256xf32>, vector<8x256xf32>, vector<8x256xf32>, vector<8x256xf32> -> vector<72x256xf32>
    %c0_12 = arith.constant 0 : index
    %c0_13 = arith.constant 0 : index
    %33 = vector.load %arg3[%c0_12, %c0_13] : memref<8x72xf32, #tpu.memory_space<vmem>>, vector<8x72xf32>
    %cst_14 = arith.constant dense<0.000000e+00> : vector<8x256xf32>
    %34 = tpu.matmul %33, %32, %cst_14 {dimension_numbers = #tpu.dot_dimension_numbers<[1], [0], [0], [1], [0, 0, 1, 1], [], []>} : vector<8x72xf32>, vector<72x256xf32>, vector<8x256xf32> -> vector<8x256xf32>
    %c0_15 = arith.constant 0 : index
    %c0_16 = arith.constant 0 : index
    %35 = vector.load %arg4[%c0_15, %c0_16] : memref<8x1xf32, #tpu.memory_space<vmem>>, vector<8x1xf32>
    %36 = vector.broadcast %35 : vector<8x1xf32> to vector<8x256xf32>
    %37 = arith.mulf %34, %36 : vector<8x256xf32>
    %c0_17 = arith.constant 0 : index
    %c0_18 = arith.constant 0 : index
    %38 = vector.load %arg5[%c0_17, %c0_18] : memref<8x1xf32, #tpu.memory_space<vmem>>, vector<8x1xf32>
    %39 = vector.broadcast %38 : vector<8x1xf32> to vector<8x256xf32>
    %40 = arith.addf %37, %39 : vector<8x256xf32>
    %cst_19 = arith.constant 0.000000e+00 : f32
    %41 = vector.broadcast %cst_19 : f32 to vector<8x256xf32>
    %42 = arith.maximumf %40, %41 : vector<8x256xf32>
    %c0_20 = arith.constant 0 : index
    %c0_21 = arith.constant 0 : index
    %43 = vector.load %arg2[%c0_20, %c0_21] : memref<3x256xf32, #tpu.memory_space<vmem>>, vector<1x256xf32>
    %44 = vector.broadcast %43 : vector<1x256xf32> to vector<8x256xf32>
    %45 = arith.mulf %42, %44 : vector<8x256xf32>
    %c2_22 = arith.constant 2 : index
    %c0_23 = arith.constant 0 : index
    %46 = vector.load %arg2[%c2_22, %c0_23] : memref<3x256xf32, #tpu.memory_space<vmem>>, vector<1x256xf32>
    %47 = vector.broadcast %46 : vector<1x256xf32> to vector<8x256xf32>
    %48 = arith.mulf %42, %47 : vector<8x256xf32>
    %cst_24 = arith.constant 0.000000e+00 : f32
    %49 = vector.broadcast %cst_24 : f32 to vector<8x17xf32>
    %50 = vector.extract_strided_slice %45 {offsets = [0, 0], sizes = [8, 239], strides = [1, 1]} : vector<8x256xf32> to vector<8x239xf32>
    %51 = tpu.concatenate %49, %50 in 1 : vector<8x17xf32>, vector<8x239xf32> -> vector<8x256xf32>
    %cst_25 = arith.constant 0.000000e+00 : f32
    %52 = vector.broadcast %cst_25 : f32 to vector<8x16xf32>
    %53 = vector.extract_strided_slice %42 {offsets = [0, 0], sizes = [8, 240], strides = [1, 1]} : vector<8x256xf32> to vector<8x240xf32>
    %54 = tpu.concatenate %52, %53 in 1 : vector<8x16xf32>, vector<8x240xf32> -> vector<8x256xf32>
    %cst_26 = arith.constant 0.000000e+00 : f32
    %55 = vector.broadcast %cst_26 : f32 to vector<8x15xf32>
    %56 = vector.extract_strided_slice %48 {offsets = [0, 0], sizes = [8, 241], strides = [1, 1]} : vector<8x256xf32> to vector<8x241xf32>
    %57 = tpu.concatenate %55, %56 in 1 : vector<8x15xf32>, vector<8x241xf32> -> vector<8x256xf32>
    %cst_27 = arith.constant 0.000000e+00 : f32
    %58 = vector.broadcast %cst_27 : f32 to vector<8x1xf32>
    %59 = vector.extract_strided_slice %45 {offsets = [0, 0], sizes = [8, 255], strides = [1, 1]} : vector<8x256xf32> to vector<8x255xf32>
    %60 = tpu.concatenate %58, %59 in 1 : vector<8x1xf32>, vector<8x255xf32> -> vector<8x256xf32>
    %cst_28 = arith.constant 0.000000e+00 : f32
    %61 = vector.broadcast %cst_28 : f32 to vector<8x1xf32>
    %62 = vector.extract_strided_slice %48 {offsets = [0, 1], sizes = [8, 255], strides = [1, 1]} : vector<8x256xf32> to vector<8x255xf32>
    %63 = tpu.concatenate %62, %61 in 1 : vector<8x255xf32>, vector<8x1xf32> -> vector<8x256xf32>
    %cst_29 = arith.constant 0.000000e+00 : f32
    %64 = vector.broadcast %cst_29 : f32 to vector<8x15xf32>
    %65 = vector.extract_strided_slice %45 {offsets = [0, 15], sizes = [8, 241], strides = [1, 1]} : vector<8x256xf32> to vector<8x241xf32>
    %66 = tpu.concatenate %65, %64 in 1 : vector<8x241xf32>, vector<8x15xf32> -> vector<8x256xf32>
    %cst_30 = arith.constant 0.000000e+00 : f32
    %67 = vector.broadcast %cst_30 : f32 to vector<8x16xf32>
    %68 = vector.extract_strided_slice %42 {offsets = [0, 16], sizes = [8, 240], strides = [1, 1]} : vector<8x256xf32> to vector<8x240xf32>
    %69 = tpu.concatenate %68, %67 in 1 : vector<8x240xf32>, vector<8x16xf32> -> vector<8x256xf32>
    %cst_31 = arith.constant 0.000000e+00 : f32
    %70 = vector.broadcast %cst_31 : f32 to vector<8x17xf32>
    %71 = vector.extract_strided_slice %48 {offsets = [0, 17], sizes = [8, 239], strides = [1, 1]} : vector<8x256xf32> to vector<8x239xf32>
    %72 = tpu.concatenate %71, %70 in 1 : vector<8x239xf32>, vector<8x17xf32> -> vector<8x256xf32>
    %73 = tpu.concatenate %51, %54, %57, %60, %42, %63, %66, %69, %72 in 0 : vector<8x256xf32>, vector<8x256xf32>, vector<8x256xf32>, vector<8x256xf32>, vector<8x256xf32>, vector<8x256xf32>, vector<8x256xf32>, vector<8x256xf32>, vector<8x256xf32> -> vector<72x256xf32>
    %c0_32 = arith.constant 0 : index
    %c0_33 = arith.constant 0 : index
    %74 = vector.load %arg6[%c0_32, %c0_33] : memref<8x72xf32, #tpu.memory_space<vmem>>, vector<8x72xf32>
    %cst_34 = arith.constant dense<0.000000e+00> : vector<8x256xf32>
    %75 = tpu.matmul %74, %73, %cst_34 {dimension_numbers = #tpu.dot_dimension_numbers<[1], [0], [0], [1], [0, 0, 1, 1], [], []>} : vector<8x72xf32>, vector<72x256xf32>, vector<8x256xf32> -> vector<8x256xf32>
    %c0_35 = arith.constant 0 : index
    %c0_36 = arith.constant 0 : index
    %76 = vector.load %arg7[%c0_35, %c0_36] : memref<8x1xf32, #tpu.memory_space<vmem>>, vector<8x1xf32>
    %77 = vector.broadcast %76 : vector<8x1xf32> to vector<8x256xf32>
    %78 = arith.mulf %75, %77 : vector<8x256xf32>
    %c0_37 = arith.constant 0 : index
    %c0_38 = arith.constant 0 : index
    %79 = vector.load %arg8[%c0_37, %c0_38] : memref<8x1xf32, #tpu.memory_space<vmem>>, vector<8x1xf32>
    %80 = vector.broadcast %79 : vector<8x1xf32> to vector<8x256xf32>
    %81 = arith.addf %78, %80 : vector<8x256xf32>
    %cst_39 = arith.constant 0.000000e+00 : f32
    %82 = vector.broadcast %cst_39 : f32 to vector<8x256xf32>
    %83 = arith.maximumf %81, %82 : vector<8x256xf32>
    %c0_40 = arith.constant 0 : index
    %c0_41 = arith.constant 0 : index
    %c0_42 = arith.constant 0 : index
    %84 = vector.load %arg9[%c0_40, %c0_41, %c0_42] : memref<1x8x256xf32, #tpu.memory_space<vmem>>, vector<1x8x256xf32>
    %85 = vector.shape_cast %84 : vector<1x8x256xf32> to vector<8x256xf32>
    %86 = vector.shape_cast %83 : vector<8x256xf32> to vector<1x8x256xf32>
    tpu.vector_store %arg9[%c0_40, %c0_41, %c0_42], %86 {strides = array<i32>} : memref<1x8x256xf32, #tpu.memory_space<vmem>>, vector<1x8x256xf32>,
    return
  }
  func.func @transform_0(%arg0: i32) -> (i32, i32, i32) {
    %c0_i32 = arith.constant 0 : i32
    %c0_i32_0 = arith.constant 0 : i32
    %c0_i32_1 = arith.constant 0 : i32
    return %arg0, %c0_i32, %c0_i32_0 : i32, i32, i32
  }
  func.func @transform_1(%arg0: i32) -> (i32, i32) {
    %c0_i32 = arith.constant 0 : i32
    %c0_i32_0 = arith.constant 0 : i32
    %c0_i32_1 = arith.constant 0 : i32
    return %c0_i32, %c0_i32_0 : i32, i32
  }
  func.func @transform_2(%arg0: i32) -> (i32, i32) {
    %c0_i32 = arith.constant 0 : i32
    %c0_i32_0 = arith.constant 0 : i32
    %c0_i32_1 = arith.constant 0 : i32
    return %c0_i32, %c0_i32_0 : i32, i32
  }
  func.func @transform_3(%arg0: i32) -> (i32, i32) {
    %c0_i32 = arith.constant 0 : i32
    %c0_i32_0 = arith.constant 0 : i32
    %c0_i32_1 = arith.constant 0 : i32
    return %c0_i32, %c0_i32_0 : i32, i32
  }
  func.func @transform_4(%arg0: i32) -> (i32, i32) {
    %c0_i32 = arith.constant 0 : i32
    %c0_i32_0 = arith.constant 0 : i32
    %c0_i32_1 = arith.constant 0 : i32
    return %c0_i32, %c0_i32_0 : i32, i32
  }
  func.func @transform_5(%arg0: i32) -> (i32, i32) {
    %c0_i32 = arith.constant 0 : i32
    %c0_i32_0 = arith.constant 0 : i32
    %c0_i32_1 = arith.constant 0 : i32
    return %c0_i32, %c0_i32_0 : i32, i32
  }
  func.func @transform_6(%arg0: i32) -> (i32, i32) {
    %c0_i32 = arith.constant 0 : i32
    %c0_i32_0 = arith.constant 0 : i32
    %c0_i32_1 = arith.constant 0 : i32
    return %c0_i32, %c0_i32_0 : i32, i32
  }
  func.func @transform_7(%arg0: i32) -> (i32, i32) {
    %c0_i32 = arith.constant 0 : i32
    %c0_i32_0 = arith.constant 0 : i32
    %c0_i32_1 = arith.constant 0 : i32
    return %c0_i32, %c0_i32_0 : i32, i32
  }
  func.func @transform_8(%arg0: i32) -> (i32, i32, i32) {
    %c0_i32 = arith.constant 0 : i32
    %c0_i32_0 = arith.constant 0 : i32
    %c0_i32_1 = arith.constant 0 : i32
    return %arg0, %c0_i32, %c0_i32_0 : i32, i32, i32
  }
}

</mosaic_0001>

<bundles_post_ra>
// kernel: double_conv.1
= control target key start
LH: loop header
LB: loop body
LE: loop exit
PB: predicated region body
PF: predicated region fallthrough
CT: control target
= control target key end

     0   :  { %s783_s27 = smov 0   ;;  %s958_s0 = inlined_call_operand.vmem [shape: f32[2,8,256], index: 0, kind: input, shape index: {}]   ;;  %s959_s1 = inlined_call_operand.vmem [shape: f32[3,256], index: 1, kind: input, shape index: {}]   ;;  %s960_s2 = inlined_call_operand.vmem [shape: f32[8,72], index: 2, kind: input, shape index: {}]   ;;  %s961_s3 = inlined_call_operand.vmem [shape: f32[8,1], index: 3, kind: input, shape index: {}]   ;;  %s962_s4 = inlined_call_operand.vmem [shape: f32[8,1], index: 4, kind: input, shape index: {}]   ;;  %s963_s5 = inlined_call_operand.vmem [shape: f32[8,72], index: 5, kind: input, shape index: {}]   ;;  %s964_s6 = inlined_call_operand.vmem [shape: f32[8,1], index: 6, kind: input, shape index: {}]   ;;  %s965_s7 = inlined_call_operand.vmem [shape: f32[8,1], index: 7, kind: input, shape index: {}]   ;;  %s966_s8 = inlined_call_operand.vmem [shape: f32[2,8,256], index: 8, kind: output, shape index: {}]  }
   0x1 LB: > { %s659_s28 = sadd.s32 4294967295, %s727_s27   ;;  %p663_p0 = scmp.ge.s32.totalorder %s727_s27, 1  ;;  %s727_s27 = sphi %s783_s27, %s18_s27  }
   0x2   : > { %p262_p1 = scmp.lt.s32.totalorder %s727_s27, 3 }
   0x4   : > { %p263_p2 = pnand %p663_p0, %p262_p1 }
   0x5   : > { %p296_p3 = scmp.lt.s32.totalorder (!%p263_p2), %s659_s28, 1  ;;  %s729_s15 = smov (!%p263_p2), 112  }
   0x6   : > { %266 = sbr.rel (%p263_p2) target bundleno = 602 (0x25a), region = 52  ;;  %s730_s16 = smov (!%p263_p2), 111  }
   0x7   : > { %s731_s17 = smov (!%p263_p2), 113   ;;  %s732_s18 = smov (!%p263_p2), 127  }
   0x8   : > { %s733_s19 = smov (!%p263_p2), 1   ;;  %s734_s20 = smov (!%p263_p2), 15  }
   0x9   : > { %s735_s21 = smov (!%p263_p2), 16   ;;  %s736_s22 = smov (!%p263_p2), 17  }
   0xb   : > { %v794_v0 = vld [vmem:[%s959_s1 + $0x2] ss:$4 sm:$0x3]  ;;  %s976_s28 = smov (!%p296_p3, %s659_s28), 1  ;;  %vm398_vm0 = vcmask 908288   ;;  %vm389_vm1 = vcmask 916480  }
   0xc   : > { %v801_v1 = vld [vmem:[%s959_s1] ss:$4 sm:$0x3]  ;;  %v319_v2 = vperm.slane %v794_v0, 0  ;;  %s699_s11 = sshll.u32 %s976_s28, 4  ;;  %v320_v7 = vperm.slane %v794_v0, 1 }
   0xd   : > { %v310_v3 = vperm.slane %v801_v1, 0  ;;  %s300_s14 = scalar_lea.vmem %s958_s0, %s699_s11  ;;  %v311_v9 = vperm.slane %v801_v1, 1  ;;  %vm380_vm2 = vcmask 924672   ;;  %v448_v20 = vld [vmem:[%s961_s3] sm:$0xff]  ;;  %v737_v22 = vmov 0  }
   0xe   : > { %v811_v4 = vld [vmem:[%s300_s14] sm:$0xff]  ;;  %v307_v8 = vld [vmem:[%s300_s14 + $0x8] sm:$0xff]  ;;  %718 = vset.pattern.permute.xlu1 %v737_v22  ;;  %vm371_vm3 = vcmask 1039360   ;;  %719 = vset.pattern.permute.xlu2 %v737_v22  ;;  %vm362_vm4 = vcmask 7168   ;;  %vm353_vm5 = vcmask 121856   ;;  %vm342_vm8 = vcmask 130048  }
   0xf   : > { %385 = vrot.lane.b32.xlu1 %v811_v4, %s729_s15  ;;  %v323_v5 = vmul.f32 %v319_v2, %v811_v4  ;;  %v314_v6 = vmul.f32 %v310_v3, %v811_v4  ;;  %v324_v10 = vmul.f32 %v320_v7, %v307_v8  ;;  %v315_v11 = vmul.f32 %v311_v9, %v307_v8  ;;  %v456_v23 = vld [vmem:[%s962_s4] sm:$0xff]  ;;  %vm858_vm6 = vmneg %vm362_vm4 }
  0x10   : > { %720 = vset.pattern.permute.xlu0 %v737_v22  ;;  %vm864_vm7 = vmneg %vm353_vm5  ;;  %vm331_vm9 = vcmask 138240   ;;  %v403_v41 = vld [vmem:[%s960_s2] sm:$0xff]  ;;  %vm404_vm12 = vcmask 588800  }
  0x11   : > { %394 = vrot.lane.b32.xlu0 %v323_v5, %s730_s16  ;;  %376 = vrot.lane.b32.xlu2 %v314_v6, %s731_s17  ;;  %vm875_vm10 = vmneg %vm342_vm8  ;;  %v592_v58 = vld [vmem:[%s965_s7] sm:$0xff] }
  0x12   : > { %vm880_vm11 = vmneg %vm331_vm9  ;;  %v584_v59 = vld [vmem:[%s964_s6] sm:$0xff] }
  0x17   : > { %387 = vrot.lane.b32.xlu1 %v307_v8, %s729_s15 }
  0x19   : > { %396 = vrot.lane.b32.xlu0 %v324_v10, %s730_s16  ;;  %378 = vrot.lane.b32.xlu2 %v315_v11, %s731_s17 }
  0x1f   : > { %369 = vrot.lane.b32.xlu1 %v324_v10, %s732_s18 }
  0x21   : > { %367 = vrot.lane.b32.xlu0 %v323_v5, %s732_s18  ;;  %358 = vrot.lane.b32.xlu2 %v314_v6, %s733_s19 }
  0x27   : > { %349 = vrot.lane.b32.xlu1 %v323_v5, %s734_s20 }
  0x29   : > { %360 = vrot.lane.b32.xlu0 %v315_v11, %s733_s19  ;;  %351 = vrot.lane.b32.xlu2 %v324_v10, %s734_s20 }
  0x2f   : > { %340 = vrot.lane.b32.xlu1 %v307_v8, %s735_s21 }
  0x31   : > { %338 = vrot.lane.b32.xlu0 %v811_v4, %s735_s21  ;;  %327 = vrot.lane.b32.xlu2 %v314_v6, %s736_s22 }
  0x37   : > { %451 = vperm.xlu1 %718, %v448_v20  }
  0x39   : > { %329 = vrot.lane.b32.xlu0 %v315_v11, %s736_s22  ;;  %459 = vperm.xlu2 %719, %v456_v23  }
  0x6b   : > { %v377_v12 = vpop.permute.xlu2 %376 }
  0x73   : > { %v379_v15 = vpop.permute.xlu2 %378 }
  0x74   : > { %v381_v24 = vsel %vm380_vm2, %v377_v12, %v379_v15 }
  0x7b   : > { %v359_v21 = vpop.permute.xlu2 %358 }
  0x81   : > { %v386_v13 = vpop.permute.xlu1 %385 }
  0x83   : > { %v395_v14 = vpop.permute.xlu0 %394  ;;  %v352_v31 = vpop.permute.xlu2 %351 }
  0x89   : > { %v388_v16 = vpop.permute.xlu1 %387 }
  0x8a   : > { %v390_v19 = vsel %vm389_vm1, %v386_v13, %v388_v16 }
  0x8b   : > { %v397_v17 = vpop.permute.xlu0 %396  ;;  %v328_v38 = vpop.permute.xlu2 %327 }
  0x8c   : > { %678 = vmatpush.msk.msra.mxu1 %vm398_vm0, %v397_v17  ;;  %v399_v18 = vsel %vm398_vm0, %v395_v14, %v397_v17 }
  0x8d   : > { %415 = vmatpush.msra.mxu0 %v399_v18 }
  0x8e   : > { %679 = vmatpush.msk.msra.mxu1 %vm389_vm1, %v388_v16  ;;  %v540_v16 = vld [vmem:[%s963_s5] sm:$0xff] }
  0x8f   : > { %416 = vmatpush.msra.mxu0 %v390_v19 }
  0x90   : > { %680 = vmatpush.msk.msra.mxu1 %vm380_vm2, %v379_v15 }
  0x91   : > { %417 = vmatpush.msra.mxu0 %v381_v24  ;;  %v370_v25 = vpop.permute.xlu1 %369 }
  0x92   : > { %681 = vmatpush.msk.msra.mxu1 %vm371_vm3, %v370_v25 }
  0x93   : > { %v368_v26 = vpop.permute.xlu0 %367  ;;  %v460_v46 = vpop.permute.xlu2 %459 }
  0x94   : > { %v372_v27 = vsel %vm371_vm3, %v368_v26, %v370_v25  ;;  %439 = vmatpush.msra.mxu1 %v307_v8 }
  0x95   : > { %418 = vmatpush.msra.mxu0 %v372_v27 }
  0x97   : > { %419 = vmatpush.msra.mxu0 %v811_v4 }
  0x99   : > { %v350_v30 = vpop.permute.xlu1 %349  ;;  %670 = vmatpush.msk.msra.mxu0 %vm858_vm6, %v359_v21 }
  0x9a   : > { %v354_v34 = vsel %vm353_vm5, %v350_v30, %v352_v31 }
  0x9b   : > { %v361_v32 = vpop.permute.xlu0 %360  ;;  %672 = vmatpush.msk.msra.mxu0 %vm864_vm7, %v350_v30 }
  0x9c   : > { %v363_v33 = vsel %vm362_vm4, %v359_v21, %v361_v32 }
  0x9d   : > { %440 = vmatpush.msra.mxu1 %v363_v33 }
  0x9f   : > { %441 = vmatpush.msra.mxu1 %v354_v34 }
  0xa1   : > { %v341_v35 = vpop.permute.xlu1 %340 }
  0xa3   : > { %v339_v37 = vpop.permute.xlu0 %338 }
  0xa4   : > { %674 = vmatpush.msk.msra.mxu0 %vm875_vm10, %v339_v37  ;;  %v343_v40 = vsel %vm342_vm8, %v339_v37, %v341_v35 }
  0xa5   : > { %442 = vmatpush.msra.mxu1 %v343_v40 }
  0xa6   : > { %676 = vmatpush.msk.msra.mxu0 %vm880_vm11, %v328_v38 }
  0xa7   : > { %677 = vmatmul.msk.f32.vlgmr.msra.gmra.mxu0 %vm404_vm12, %v403_v41 }
  0xa9   : > { %v452_v44 = vpop.permute.xlu1 %451 }
  0xab   : > { %v330_v42 = vpop.permute.xlu0 %329 }
  0xac   : > { %v332_v43 = vsel %vm331_vm9, %v328_v38, %v330_v42 }
  0xad   : > { %443 = vmatpush.msra.mxu1 %v332_v43 }
  0xae   : > { %682 = vmatmul.msk.f32.vlgmr.msra.gmra.mxu1 %vm404_vm12, %v403_v41 }
 0x124   : > { %v425_v45 = vpop.f32.mrf.mxu0 }
 0x125   : > { %v454_v47 = vmul.f32 %v452_v44, %v425_v45 }
 0x127   : > { %v462_v48 = vadd.f32 %v460_v46, %v454_v47 }
 0x129   : > { %v464_v49 = vmax.f32 %v462_v48, 0.0 }
 0x12b   : > { %v445_v50 = vpop.f32.mrf.mxu1  ;;  %524 = vrot.lane.b32.xlu2 %v464_v49, %s729_s15  ;;  %v468_v56 = vmul.f32 %v464_v49, %v319_v2  ;;  %v466_v57 = vmul.f32 %v464_v49, %v310_v3 }
 0x12c   : > { %v455_v51 = vmul.f32 %v452_v44, %v445_v50 }
 0x12e   : > { %v463_v52 = vadd.f32 %v460_v46, %v455_v51 }
 0x130   : > { %v465_v53 = vmax.f32 %v463_v52, 0.0 }
 0x132   : > { %526 = vrot.lane.b32.xlu0 %v465_v53, %s729_s15  ;;  %v469_v54 = vmul.f32 %v465_v53, %v320_v7  ;;  %v467_v55 = vmul.f32 %v465_v53, %v311_v9 }
 0x134   : > { %534 = vrot.lane.b32.xlu1 %v469_v54, %s730_s16  ;;  %518 = vrot.lane.b32.xlu2 %v467_v55, %s731_s17 }
 0x13a   : > { %502 = vrot.lane.b32.xlu0 %v467_v55, %s733_s19 }
 0x13c   : > { %510 = vrot.lane.b32.xlu1 %v469_v54, %s732_s18  ;;  %494 = vrot.lane.b32.xlu2 %v469_v54, %s734_s20 }
 0x142   : > { %532 = vrot.lane.b32.xlu0 %v468_v56, %s730_s16 }
 0x144   : > { %500 = vrot.lane.b32.xlu2 %v466_v57, %s733_s19  ;;  %516 = vrot.lane.b32.xlu1 %v466_v57, %s731_s17 }
 0x14a   : > { %508 = vrot.lane.b32.xlu0 %v468_v56, %s732_s18  ;;  %s305_s18 = scalar_lea.vmem %s966_s8, %s699_s11 }
 0x14c   : > { %472 = vrot.lane.b32.xlu2 %v466_v57, %s736_s22  ;;  %492 = vrot.lane.b32.xlu1 %v468_v56, %s734_s20 }
 0x152   : > { %482 = vrot.lane.b32.xlu0 %v464_v49, %s735_s21 }
 0x154   : > { %595 = vperm.xlu2 %719, %v592_v58   ;;  %484 = vrot.lane.b32.xlu1 %v465_v53, %s735_s21 }
 0x15a   : > { %474 = vrot.lane.b32.xlu0 %v467_v55, %s736_s22 }
 0x15c   : > { %587 = vperm.xlu1 %718, %v584_v59  }
 0x185   : > { %v525_v60 = vpop.permute.xlu2 %524 }
 0x18e   : > { %v519_v61 = vpop.permute.xlu2 %518 }
 0x196   : > { %v495_v0 = vpop.permute.xlu2 %494 }
 0x19e   : > { %v501_v3 = vpop.permute.xlu2 %500 }
 0x1a4   : > { %v527_v62 = vpop.permute.xlu0 %526 }
 0x1a5   : > { %v528_v8 = vsel %vm389_vm1, %v525_v60, %v527_v62 }
 0x1a6   : > { %v535_v63 = vpop.permute.xlu1 %534  ;;  %v473_v17 = vpop.permute.xlu2 %472 }
 0x1a7   : > { %692 = vmatpush.msk.msra.mxu3 %vm398_vm0, %v535_v63 }
 0x1a9   : > { %693 = vmatpush.msk.msra.mxu3 %vm389_vm1, %v527_v62 }
 0x1ab   : > { %694 = vmatpush.msk.msra.mxu3 %vm380_vm2, %v519_v61 }
 0x1ac   : > { %v503_v1 = vpop.permute.xlu0 %502 }
 0x1ad   : > { %v504_v4 = vsel %vm362_vm4, %v501_v3, %v503_v1 }
 0x1ae   : > { %v511_v2 = vpop.permute.xlu1 %510  ;;  %v596_v24 = vpop.permute.xlu2 %595 }
 0x1af   : > { %695 = vmatpush.msk.msra.mxu3 %vm371_vm3, %v511_v2 }
 0x1b1   : > { %575 = vmatpush.msra.mxu3 %v465_v53 }
 0x1b3   : > { %576 = vmatpush.msra.mxu3 %v504_v4 }
 0x1b4   : > { %v533_v5 = vpop.permute.xlu0 %532 }
 0x1b5   : > { %v536_v6 = vsel %vm398_vm0, %v533_v5, %v535_v63 }
 0x1b6   : > { %551 = vmatpush.msra.mxu2 %v536_v6  ;;  %v517_v7 = vpop.permute.xlu1 %516 }
 0x1b7   : > { %v520_v9 = vsel %vm380_vm2, %v517_v7, %v519_v61 }
 0x1b8   : > { %552 = vmatpush.msra.mxu2 %v528_v8 }
 0x1ba   : > { %553 = vmatpush.msra.mxu2 %v520_v9 }
 0x1bc   : > { %v509_v10 = vpop.permute.xlu0 %508 }
 0x1bd   : > { %v512_v11 = vsel %vm371_vm3, %v509_v10, %v511_v2 }
 0x1be   : > { %554 = vmatpush.msra.mxu2 %v512_v11  ;;  %v493_v12 = vpop.permute.xlu1 %492 }
 0x1bf   : > { %v496_v13 = vsel %vm353_vm5, %v493_v12, %v495_v0 }
 0x1c0   : > { %555 = vmatpush.msra.mxu2 %v464_v49  ;;  %577 = vmatpush.msra.mxu3 %v496_v13 }
 0x1c2   : > { %684 = vmatpush.msk.msra.mxu2 %vm858_vm6, %v501_v3 }
 0x1c4   : > { %v483_v14 = vpop.permute.xlu0 %482  ;;  %686 = vmatpush.msk.msra.mxu2 %vm864_vm7, %v493_v12 }
 0x1c6   : > { %688 = vmatpush.msk.msra.mxu2 %vm875_vm10, %v483_v14  ;;  %v485_v15 = vpop.permute.xlu1 %484 }
 0x1c7   : > { %v486_v18 = vsel %vm342_vm8, %v483_v14, %v485_v15 }
 0x1c8   : > { %690 = vmatpush.msk.msra.mxu2 %vm880_vm11, %v473_v17  ;;  %578 = vmatpush.msra.mxu3 %v486_v18 }
 0x1c9   : > { %691 = vmatmul.msk.f32.vlgmr.msra.gmra.mxu2 %vm404_vm12, %v540_v16 }
 0x1cc   : > { %v475_v19 = vpop.permute.xlu0 %474 }
 0x1cd   : > { %v476_v20 = vsel %vm331_vm9, %v473_v17, %v475_v19 }
 0x1ce   : > { %579 = vmatpush.msra.mxu3 %v476_v20  ;;  %v588_v21 = vpop.permute.xlu1 %587 }
 0x1cf   : > { %696 = vmatmul.msk.f32.vlgmr.msra.gmra.mxu3 %vm404_vm12, %v540_v16 }
 0x24c   : > { %v561_v22 = vpop.f32.mrf.mxu2 }
 0x24d   : > { %v590_v23 = vmul.f32 %v588_v21, %v561_v22 }
 0x24f   : > { %v598_v25 = vadd.f32 %v596_v24, %v590_v23 }
 0x251   : > { %v600_v26 = vmax.f32 %v598_v25, 0.0 }
 0x252   : > { %v581_v27 = vpop.f32.mrf.mxu3 }
 0x253   : > { %602 = vst [vmem:[%s305_s18] sm:$0xff] %v600_v26  ;;  %v591_v28 = vmul.f32 %v588_v21, %v581_v27 }
 0x255   : > { %v599_v29 = vadd.f32 %v596_v24, %v591_v28 }
 0x257   : > { %v601_v30 = vmax.f32 %v599_v29, 0.0 }
 0x259   : > { %603 = vst [vmem:[%s305_s18 + $0x8] sm:$0xff] %v601_v30 }
 0x25a PF: > { %s18_s27 = sadd.s32 1, %s727_s27  }
 0x25b   : > { %p15_p4 = scmp.ge.s32.totalorder %s18_s27, 4  }
 0x25d   :  { %17 = sbr.rel (!%p15_p4) target bundleno = 1 (0x1), region = 83 }

</bundles_post_ra>
